<compile_context>
chip_gen: v7x
topology: tpu7x:2x2x1
jax: 0.10.0
libtpu: 0.0.40
codegen_flags: <defaults>
</compile_context>

<pallas_src>
import jax
import jax.numpy as jnp
from jax.experimental import pallas as pl
from jax.experimental.pallas import tpu as pltpu

IN_FEATURES = 784
OUT_FEATURES = 10
N_PAD = 128  # weight N padded to a full lane group for a dense MXU matmul


def _round_up(x, m):
    return ((x + m - 1) // m) * m


def _cdiv(a, b):
    return -(-a // b)


def linear_kernel(x_ref, w_ref, b_ref, o_ref):
    # x tile arrives as f32 straight from HBM; cast to bf16 at the MXU feed,
    # accumulate in f32, add f32 bias, store only the 10 real output columns.
    acc = jnp.dot(
        x_ref[...].astype(jnp.bfloat16),
        w_ref[...],
        preferred_element_type=jnp.float32,
    )
    o_ref[...] = acc[:, :OUT_FEATURES] + b_ref[...]


def pack_params(w, b):
    """One-time packing of torch-Linear params.

    w: (10, 784) f32, b: (10,) f32  ->  w_p: (784, 128) bf16, b_p: (1, 10) f32.
    Do this once per parameter update, NOT per forward call.
    """
    w_p = jnp.zeros((IN_FEATURES, N_PAD), jnp.bfloat16)
    w_p = w_p.at[:, :OUT_FEATURES].set(w.T.astype(jnp.bfloat16))
    b_p = b.astype(jnp.float32).reshape(1, OUT_FEATURES)
    return w_p, b_p


def mnist_logistic_forward(x, w_p, b_p, *, block_b=1024):
    """x: (B, 784) f32, w_p/b_p from pack_params() -> (B, 10) f32 logits."""
    B = x.shape[0]

    # Tile selection: multiple of 8 (f32 sublane packing), capped at block_b
    # (v5e scoped-VMEM safety), balanced across tiles to minimize tail padding.
    # B > block_b automatically gives >=2 grid steps (v7x megacore split).
    tb = min(block_b, _round_up(B, 8))
    n_tiles = _cdiv(B, tb)
    tb = _round_up(_cdiv(B, n_tiles), 8)
    Bp = tb * n_tiles

    if Bp != B:
        x = jnp.pad(x, ((0, Bp - B), (0, 0)))

    out = pl.pallas_call(
        linear_kernel,
        out_shape=jax.ShapeDtypeStruct((Bp, OUT_FEATURES), jnp.float32),
        grid=(n_tiles,),
        in_specs=[
            # Streamed batch tile: f32, full 784-wide rows (last dim == array extent).
            pl.BlockSpec((tb, IN_FEATURES), lambda i: (i, 0)),
            # Weight: constant index_map -> stays VMEM-resident across the grid.
            pl.BlockSpec((IN_FEATURES, N_PAD), lambda i: (0, 0)),
            # Bias: tiny, VMEM-resident.
            pl.BlockSpec((1, OUT_FEATURES), lambda i: (0, 0)),
        ],
        # Lane-narrow but byte-minimal output: 40 B/row instead of a 512 B/row
        # padded slab + trailing slice. Kernel stays bound by the x read path.
        out_specs=pl.BlockSpec((tb, OUT_FEATURES), lambda i: (i, 0)),
        compiler_params=pltpu.CompilerParams(
            # Independent batch tiles -> megacore sharding on v7x.
            dimension_semantics=("parallel",),
        ),
        cost_estimate=pl.CostEstimate(
            flops=2 * Bp * IN_FEATURES * N_PAD,
            bytes_accessed=(
                Bp * IN_FEATURES * 4          # x (f32)
                + IN_FEATURES * N_PAD * 2     # W (bf16)
                + OUT_FEATURES * 4            # bias
                + Bp * OUT_FEATURES * 4       # logits (f32)
            ),
            transcendentals=0,
        ),
    )(x, w_p, b_p)

    return out if Bp == B else out[:B]


def init_params(key):
    # Deterministic init mimicking nn.Linear's uniform(-1/sqrt(fan_in), 1/sqrt(fan_in)).
    kw, kb = jax.random.split(key)
    bound = 1.0 / jnp.sqrt(jnp.float32(IN_FEATURES))
    w = jax.random.uniform(kw, (OUT_FEATURES, IN_FEATURES), jnp.float32, -bound, bound)
    b = jax.random.uniform(kb, (OUT_FEATURES,), jnp.float32, -bound, bound)
    return w, b


if __name__ == "__main__":
    key = jax.random.PRNGKey(0)
    kx, kp = jax.random.split(key)

    batch = 8
    x = jax.random.normal(kx, (batch, IN_FEATURES), jnp.float32)
    w, b = init_params(kp)

    # One-time param packing (hoisted out of the forward path).
    w_p, b_p = pack_params(w, b)

    out = mnist_logistic_forward(x, w_p, b_p)
    out = jax.block_until_ready(out)
    assert out.shape == (batch, OUT_FEATURES)

    # Tight check vs. a reference with the same bf16 operand quantization + f32 accumulation.
    x_bf = x.astype(jnp.bfloat16).astype(jnp.float32)
    w_bf = w.astype(jnp.bfloat16).astype(jnp.float32)
    ref_bf = x_bf @ w_bf.T + b
    assert jnp.allclose(out, ref_bf, atol=1e-5, rtol=1e-5)

    # Loose check vs. full-f32 torch-Linear semantics (bf16 quantization noise only).
    ref_f32 = x @ w.T + b
    assert jnp.allclose(out, ref_f32, atol=5e-2, rtol=5e-2)

    # Also exercise a batch that doesn't divide the tile (row-padding path).
    batch2 = 13
    x2 = jax.random.normal(kx, (batch2, IN_FEATURES), jnp.float32)
    out2 = jax.block_until_ready(mnist_logistic_forward(x2, w_p, b_p))
    ref2 = (x2.astype(jnp.bfloat16).astype(jnp.float32)
            @ w.astype(jnp.bfloat16).astype(jnp.float32).T + b)
    assert out2.shape == (batch2, OUT_FEATURES)
    assert jnp.allclose(out2, ref2, atol=1e-5, rtol=1e-5)

    print("KERNEL_OK")
</pallas_src>

<mosaic_0001>
module attributes {stable_mosaic.version = 11 : i64} {
  func.func @linear_kernel(%arg0: i32, %arg1: memref<8x784xf32, #tpu.memory_space<vmem>>, %arg2: memref<784x128xbf16, #tpu.memory_space<vmem>>, %arg3: memref<1x10xf32, #tpu.memory_space<vmem>>, %arg4: memref<8x10xf32, #tpu.memory_space<vmem>>) attributes {dimension_semantics = [#tpu.dimension_semantics<parallel>], iteration_bounds = array<i64: 1>, scalar_prefetch = 0 : i64, scratch_operands = 0 : i64, tpu.core_type = #tpu.core_type<tc>, window_params = [{transform_indices = @transform_0, window_bounds = array<i64: 8, 784>}, {pipeline_mode = #tpu.pipeline_mode<synchronous>, transform_indices = @transform_1, window_bounds = array<i64: 784, 128>}, {pipeline_mode = #tpu.pipeline_mode<synchronous>, transform_indices = @transform_2, window_bounds = array<i64: 1, 10>}, {transform_indices = @transform_3, window_bounds = array<i64: 8, 10>}]} {
    %c0 = arith.constant 0 : index
    %c0_0 = arith.constant 0 : index
    %0 = vector.load %arg1[%c0, %c0_0] : memref<8x784xf32, #tpu.memory_space<vmem>>, vector<8x784xf32>
    %1 = arith.truncf %0 : vector<8x784xf32> to vector<8x784xbf16>
    %c0_1 = arith.constant 0 : index
    %c0_2 = arith.constant 0 : index
    %2 = vector.load %arg2[%c0_1, %c0_2] : memref<784x128xbf16, #tpu.memory_space<vmem>>, vector<784x128xbf16>
    %cst = arith.constant dense<0.000000e+00> : vector<8x128xf32>
    %3 = tpu.matmul %1, %2, %cst {dimension_numbers = #tpu.dot_dimension_numbers<[1], [0], [0], [1], [0, 0, 1, 1], [], []>} : vector<8x784xbf16>, vector<784x128xbf16>, vector<8x128xf32> -> vector<8x128xf32>
    %4 = vector.extract_strided_slice %3 {offsets = [0, 0], sizes = [8, 10], strides = [1, 1]} : vector<8x128xf32> to vector<8x10xf32>
    %c0_3 = arith.constant 0 : index
    %c0_4 = arith.constant 0 : index
    %5 = vector.load %arg3[%c0_3, %c0_4] : memref<1x10xf32, #tpu.memory_space<vmem>>, vector<1x10xf32>
    %6 = vector.broadcast %5 : vector<1x10xf32> to vector<8x10xf32>
    %7 = arith.addf %4, %6 : vector<8x10xf32>
    %c0_5 = arith.constant 0 : index
    %c0_6 = arith.constant 0 : index
    %8 = vector.load %arg4[%c0_5, %c0_6] : memref<8x10xf32, #tpu.memory_space<vmem>>, vector<8x10xf32>
    tpu.vector_store %arg4[%c0_5, %c0_6], %7 {strides = array<i32>} : memref<8x10xf32, #tpu.memory_space<vmem>>, vector<8x10xf32>,
    return
  }
  func.func @transform_0(%arg0: i32) -> (i32, i32) {
    %c0_i32 = arith.constant 0 : i32
    %c0_i32_0 = arith.constant 0 : i32
    return %arg0, %c0_i32 : i32, i32
  }
  func.func @transform_1(%arg0: i32) -> (i32, i32) {
    %c0_i32 = arith.constant 0 : i32
    %c0_i32_0 = arith.constant 0 : i32
    %c0_i32_1 = arith.constant 0 : i32
    return %c0_i32, %c0_i32_0 : i32, i32
  }
  func.func @transform_2(%arg0: i32) -> (i32, i32) {
    %c0_i32 = arith.constant 0 : i32
    %c0_i32_0 = arith.constant 0 : i32
    %c0_i32_1 = arith.constant 0 : i32
    return %c0_i32, %c0_i32_0 : i32, i32
  }
  func.func @transform_3(%arg0: i32) -> (i32, i32) {
    %c0_i32 = arith.constant 0 : i32
    %c0_i32_0 = arith.constant 0 : i32
    return %arg0, %c0_i32 : i32, i32
  }
}

</mosaic_0001>

<bundles_post_ra>
// kernel: tpu_custom_call.1
= control target key start
LH: loop header
LB: loop body
LE: loop exit
PB: predicated region body
PF: predicated region fallthrough
CT: control target
= control target key end

     0   :  { %8 = vsyncpa [#allocation3], 0  ;;  %s964_s0 = inlined_call_operand.hbm [shape: f32[8,784], index: 0, kind: input, shape index: {}]   ;;  %s965_s1 = inlined_call_operand.hbm [shape: bf16[784,128], index: 1, kind: input, shape index: {}]   ;;  %s966_s2 = inlined_call_operand.vmem [shape: f32[1,10], index: 2, kind: input, shape index: {}]   ;;  %s967_s3 = inlined_call_operand.hbm [shape: f32[8,10], index: 3, kind: output, shape index: {}]  }
   0x1   :  { %9 = vsyncpa [#allocation6], 0 }
   0x2   :  { %10 = vsyncpa [#allocation4], 0  ;;  %s891_s12 = smov [#allocation2]   ;;  %s892_s14 = smov [#allocation5]  }
   0x3   :  { %s17_s13 = sshll.u32 %s891_s12, 4  ;;  %s26_s15 = sshll.u32 %s892_s14, 4  ;;  %s18_s13 = int_to_ptr.vmem [resolvable:$true] %s17_s13  ;;  %s918_s15 = int_to_ptr.vmem [resolvable:$true] %s26_s15 }
   0x4   :  { %s819_s18 = scalar_lea.hbm %s964_s0, 896 }
   0x5   :  { %p820_p0 = scmp.ne.s32.totalorder %s964_s0, %s819_s18  ;;  %p823_p1 = scmp.lt.u32.totalorder %s819_s18, %s964_s0 }
   0x7   :  { %p825_p2 = pnand %p823_p1, %p820_p0 }
   0x9   :  { %828 = shalt.err (!%p825_p2)
}
   0xa   :  { %s829_s23 = scalar_lea.vmem %s18_s13, 896  ;;  %p834_p4 = scmp.lt.s32.totalorder %s18_s13, %s18_s13 }
   0xb   :  { %p830_p3 = scmp.ne.s32.totalorder %s18_s13, %s829_s23  ;;  %p835_p5 = scmp.lt.s32.totalorder %s829_s23, %s829_s23 }
   0xd   :  { %p836_p6 = por %p835_p5, %p834_p4 }
   0xf   :  { %p837_p7 = pnand %p836_p6, %p830_p3 }
  0x11   :  { %840 = shalt.err (!%p837_p7)
}
  0x12   :  { %20 = dma.hbm_to_vmem [thread:$0]  %s964_s0, 896, %s18_s13, [#allocation3]  }
  0x13   :  { %s841_s28 = scalar_lea.hbm %s965_s1, 6272 }
  0x14   :  { %p842_p8 = scmp.ne.s32.totalorder %s965_s1, %s841_s28  ;;  %p845_p9 = scmp.lt.u32.totalorder %s841_s28, %s965_s1 }
  0x16   :  { %p847_p10 = pnand %p845_p9, %p842_p8 }
  0x18   :  { %850 = shalt.err (!%p847_p10)
}
  0x19   :  { %s851_s6 = scalar_lea.vmem %s918_s15, 6272  ;;  %p856_p12 = scmp.lt.s32.totalorder %s918_s15, %s918_s15 }
  0x1a   :  { %p852_p11 = scmp.ne.s32.totalorder %s918_s15, %s851_s6  ;;  %p857_p13 = scmp.lt.s32.totalorder %s851_s6, %s851_s6 }
  0x1c   :  { %p858_p0 = por %p857_p13, %p856_p12 }
  0x1e   :  { %p859_p1 = pnand %p858_p0, %p852_p11 }
  0x20   :  { %862 = shalt.err (!%p859_p1)
}
  0x21   :  { %s893_s0 = smov 64   ;;  %s894_s7 = smov 4  }
  0x22   :  { %32 = dma.hbm_to_vmem [thread:$0]  %s965_s1, 6272, %s918_s15, [#allocation6], %s893_s0, %s893_s0, %s894_s7  }
  0x23   :  { %885 = dma.done.wait [#allocation3], 896  }
  0x24   :  { %886 = vsyncadd [#allocation3], 4294966400 }
  0x25   :  { %887 = dma.done.wait [#allocation6], 6272  }
  0x26   :  { %888 = vsyncadd [#allocation6], 4294961024  ;;  %v770_v0 = vld [vmem:[#allocation5 + $0x40] sm:$0xff]   ;;  %v774_v4 = vld [vmem:[#allocation5 + $0x48] sm:$0xff]   ;;  %v895_v41 = vmov 0.0   ;;  %vm896_vm0 = vmmov 0  }
  0x27   :  { %v771_v1 = vld [vmem:[#allocation5 + $0xc0] sm:$0xff]   ;;  %689 = vmatprep.subr.bf16.mxu0 %v770_v0  ;;  %v775_v5 = vld [vmem:[#allocation5 + $0xc8] sm:$0xff]   ;;  %v778_v8 = vld [vmem:[#allocation5 + $0x50] sm:$0xff]   ;;  %vm448_vm1 = vcmask 130048   ;;  %s897_s11 = smov [#allocation7]   ;;  %vm620_vm2 = vcmask 80896  }
  0x28   :  { %v772_v2 = vld [vmem:[#allocation5] sm:$0xff]   ;;  %711 = vmatprep.subr.bf16.mxu1 %v771_v1  ;;  %v776_v6 = vld [vmem:[#allocation5 + $0x8] sm:$0xff]   ;;  %v779_v9 = vld [vmem:[#allocation5 + $0xd0] sm:$0xff]   ;;  %s628_s12 = sshll.u32 %s897_s11, 4  ;;  %s629_s12 = int_to_ptr.vmem [resolvable:$true] %s628_s12 }
  0x29   :  { %v773_v3 = vld [vmem:[#allocation5 + $0x80] sm:$0xff]   ;;  %690 = vmatpush3.bf16.msra.mxu0 %v772_v2  ;;  %v777_v7 = vld [vmem:[#allocation5 + $0x88] sm:$0xff]   ;;  %v780_v10 = vld [vmem:[#allocation5 + $0x10] sm:$0xff]   ;;  %s863_s13 = scalar_lea.vmem %s629_s12, 128  ;;  %p868_p3 = scmp.lt.s32.totalorder %s629_s12, %s629_s12 }
  0x2a   :  { %712 = vmatpush3.bf16.msra.mxu1 %v773_v3  ;;  %691 = vmatprep.subr.bf16.mxu0 %v774_v4  ;;  %v781_v11 = vld [vmem:[#allocation5 + $0x90] sm:$0xff]   ;;  %v782_v12 = vld [vmem:[#allocation5 + $0x58] sm:$0xff]   ;;  %v786_v16 = vld [vmem:[#allocation5 + $0x60] sm:$0xff]   ;;  %p864_p2 = scmp.ne.s32.totalorder %s629_s12, %s863_s13  ;;  %p869_p4 = scmp.lt.s32.totalorder %s863_s13, %s863_s13 }
  0x2b   :  { %713 = vmatprep.subr.bf16.mxu1 %v775_v5  ;;  %v783_v13 = vld [vmem:[#allocation5 + $0xd8] sm:$0xff]   ;;  %v787_v17 = vld [vmem:[#allocation5 + $0xe0] sm:$0xff]   ;;  %v790_v20 = vld [vmem:[#allocation5 + $0x68] sm:$0xff]  }
  0x2c   :  { %v784_v14 = vld [vmem:[#allocation5 + $0x18] sm:$0xff]   ;;  %v788_v18 = vld [vmem:[#allocation5 + $0x20] sm:$0xff]   ;;  %v791_v21 = vld [vmem:[#allocation5 + $0xe8] sm:$0xff]   ;;  %p870_p5 = por %p869_p4, %p868_p3 }
  0x2d   :  { %692 = vmatpush3.bf16.msra.mxu0 %v776_v6  ;;  %v785_v15 = vld [vmem:[#allocation5 + $0x98] sm:$0xff]   ;;  %v789_v19 = vld [vmem:[#allocation5 + $0xa0] sm:$0xff]   ;;  %v792_v22 = vld [vmem:[#allocation5 + $0x28] sm:$0xff]  }
  0x2e   :  { %714 = vmatpush3.bf16.msra.mxu1 %v777_v7  ;;  %693 = vmatprep.subr.bf16.mxu0 %v778_v8  ;;  %v793_v23 = vld [vmem:[#allocation5 + $0xa8] sm:$0xff]   ;;  %v794_v24 = vld [vmem:[#allocation5 + $0x70] sm:$0xff]   ;;  %v798_v28 = vld [vmem:[#allocation5 + $0x78] sm:$0xff]   ;;  %p871_p6 = pnand %p870_p5, %p864_p2 }
  0x2f   :  { %715 = vmatprep.subr.bf16.mxu1 %v779_v9  ;;  %v795_v25 = vld [vmem:[#allocation5 + $0xf0] sm:$0xff]   ;;  %v799_v29 = vld [vmem:[#allocation5 + $0xf8] sm:$0xff]   ;;  %v45_v33 = vld [vmem:[#allocation2 + $0x18] sm:$0xff] }
  0x30   :  { %v796_v26 = vld [vmem:[#allocation5 + $0x30] sm:$0xff]   ;;  %v800_v30 = vld [vmem:[#allocation5 + $0x38] sm:$0xff]   ;;  %v42_v34 = vld [vmem:[#allocation2] sm:$0xff]  ;;  %v52_v36 = vpack.c.bf16 %v45_v33, %v45_v33 }
  0x31   :  { %694 = vmatpush3.bf16.msra.mxu0 %v780_v10  ;;  %v797_v27 = vld [vmem:[#allocation5 + $0xb0] sm:$0xff]   ;;  %v801_v31 = vld [vmem:[#allocation5 + $0xb8] sm:$0xff]   ;;  %v49_v37 = vpack.c.bf16 %v42_v34, %v42_v34  ;;  %v802_v40 = vld [vmem:[#allocation5 + $0x140] sm:$0xff]  }
  0x32   :  { %716 = vmatpush3.bf16.msra.mxu1 %v781_v11  ;;  %695 = vmatprep.subr.bf16.mxu0 %v782_v12  ;;  %v43_v32 = vld [vmem:[#allocation2 + $0x8] sm:$0xff]  ;;  %v44_v38 = vld [vmem:[#allocation2 + $0x10] sm:$0xff]  ;;  %v803_v42 = vld [vmem:[#allocation5 + $0x100] sm:$0xff]  }
  0x33   :  { %717 = vmatprep.subr.bf16.mxu1 %v783_v13  ;;  %v50_v35 = vpack.c.bf16 %v43_v32, %v43_v32  ;;  %v51_v39 = vpack.c.bf16 %v44_v38, %v44_v38  ;;  %524 = vmatprep.mubr.bf16.mxu1 %v52_v36  ;;  %v804_v43 = vld [vmem:[#allocation5 + $0x148] sm:$0xff]   ;;  %v806_v45 = vld [vmem:[#allocation5 + $0x150] sm:$0xff]   ;;  %v808_v47 = vld [vmem:[#allocation5 + $0x158] sm:$0xff]  }
  0x34   :  { %v805_v44 = vld [vmem:[#allocation5 + $0x108] sm:$0xff]   ;;  %v807_v46 = vld [vmem:[#allocation5 + $0x110] sm:$0xff]   ;;  %v809_v48 = vld [vmem:[#allocation5 + $0x118] sm:$0xff]  }
  0x35   :  { %696 = vmatpush3.bf16.msra.mxu0 %v784_v14  ;;  %484 = vmatprep.mubr.bf16.mxu0 %v50_v35  ;;  %v810_v49 = vld [vmem:[#allocation5 + $0x160] sm:$0xff]   ;;  %v47_v52 = vld [vmem:[#allocation2 + $0x28] sm:$0xff]  ;;  %v812_v53 = vld [vmem:[#allocation5 + $0x168] sm:$0xff]  }
  0x36   :  { %718 = vmatpush3.bf16.msra.mxu1 %v785_v15  ;;  %697 = vmatprep.subr.bf16.mxu0 %v786_v16  ;;  %v811_v50 = vld [vmem:[#allocation5 + $0x120] sm:$0xff]   ;;  %v54_v54 = vpack.c.bf16 %v47_v52, %v47_v52  ;;  %v48_v55 = vld [vmem:[#allocation2 + $0x30] sm:$0xff]  ;;  %v813_v57 = vld [vmem:[#allocation5 + $0x128] sm:$0xff]  }
  0x37   :  { %719 = vmatprep.subr.bf16.mxu1 %v787_v17  ;;  %v818_v51 = vld [vmem:[#allocation5 + $0x180] sm:$0xff]   ;;  %v55_v56 = vpack.c.bf16 %v48_v55, %v48_v55  ;;  %v814_v58 = vld [vmem:[#allocation5 + $0x170] sm:$0xff]   ;;  %v816_v60 = vld [vmem:[#allocation5 + $0x178] sm:$0xff]  }
  0x38   :  { %v815_v59 = vld [vmem:[#allocation5 + $0x130] sm:$0xff]   ;;  %v817_v61 = vld [vmem:[#allocation5 + $0x138] sm:$0xff]   ;;  %v46_v62 = vld [vmem:[#allocation2 + $0x20] sm:$0xff] }
  0x39   :  { %698 = vmatpush3.bf16.msra.mxu0 %v788_v18  ;;  %v53_v63 = vpack.c.bf16 %v46_v62, %v46_v62 }
  0x3a   :  { %720 = vmatpush3.bf16.msra.mxu1 %v789_v19  ;;  %699 = vmatprep.subr.bf16.mxu0 %v790_v20 }
  0x3b   :  { %721 = vmatprep.subr.bf16.mxu1 %v791_v21  ;;  %v688_v21 = vld [vmem:[%s966_s2] ss:$0 sm:$0xff] }
  0x3d   :  { %700 = vmatpush3.bf16.msra.mxu0 %v792_v22 }
  0x3e   :  { %722 = vmatpush3.bf16.msra.mxu1 %v793_v23  ;;  %701 = vmatprep.subr.bf16.mxu0 %v794_v24 }
  0x3f   :  { %723 = vmatprep.subr.bf16.mxu1 %v795_v25 }
  0x41   :  { %702 = vmatpush3.bf16.msra.mxu0 %v796_v26 }
  0x42   :  { %724 = vmatpush3.bf16.msra.mxu1 %v797_v27  ;;  %703 = vmatprep.subr.bf16.mxu0 %v798_v28 }
  0x43   :  { %725 = vmatprep.subr.bf16.mxu1 %v799_v29 }
  0x45   :  { %704 = vmatpush3.bf16.msra.mxu0 %v800_v30 }
  0x46   :  { %726 = vmatpush3.bf16.msra.mxu1 %v801_v31  ;;  %733 = vmatprep.subr.bf16.mxu0 %v802_v40 }
  0x47   :  { %757 = vmatprep.subr.bf16.mxu1 %v895_v41 }
  0x48   :  { %485 = vmatmul.mubr.bf16.vlgmr.msra.gmra.mrb[0].mxu0 %v49_v37 }
  0x49   :  { %525 = vmatmul.mubr.bf16.vlgmr.msra.gmra.mrb[0].mxu1 %v51_v39  ;;  %734 = vmatpush3.bf16.msra.mxu0 %v803_v42 }
  0x4a   :  { %759 = vmatprep.mubr.msk.bf16.mxu1 %vm896_vm0, %v895_v41  ;;  %735 = vmatprep.subr.bf16.mxu0 %v804_v43 }
  0x4b   :  { %758 = vmatpush3.bf16.msra.mxu1 %v818_v51  ;;  %564 = vmatprep.mubr.bf16.mxu0 %v54_v54 }
  0x4d   :  { %736 = vmatpush3.bf16.msra.mxu0 %v805_v44 }
  0x4e   :  { %737 = vmatprep.subr.bf16.mxu0 %v806_v45 }
  0x51   :  { %738 = vmatpush3.bf16.msra.mxu0 %v807_v46  ;;  %760 = vmatmul.mubr.msk.bf16.vlgmr.msra.gmra.mrb[4].mxu1 %vm448_vm1, %v55_v56 }
  0x52   :  { %739 = vmatprep.subr.bf16.mxu0 %v808_v47 }
  0x55   :  { %740 = vmatpush3.bf16.msra.mxu0 %v809_v48 }
  0x56   :  { %741 = vmatprep.subr.bf16.mxu0 %v810_v49 }
  0x59   :  { %742 = vmatpush3.bf16.msra.mxu0 %v811_v50 }
  0x5a   :  { %743 = vmatprep.subr.bf16.mxu0 %v812_v53 }
  0x5d   :  { %744 = vmatpush3.bf16.msra.mxu0 %v813_v57 }
  0x5e   :  { %745 = vmatprep.subr.bf16.mxu0 %v814_v58 }
  0x61   :  { %746 = vmatpush3.bf16.msra.mxu0 %v815_v59 }
  0x62   :  { %747 = vmatprep.subr.bf16.mxu0 %v816_v60 }
  0x65   :  { %748 = vmatpush3.bf16.msra.mxu0 %v817_v61 }
  0x68   :  { %565 = vmatmul.mubr.bf16.vlgmr.msra.gmra.mrb[4].mxu0 %v53_v63 }
 0x11b   :  { %v705_v0 = vpop.f32.mrb[0].mxu0 }
 0x11c   :  { %v727_v1 = vpop.f32.mrb[0].mxu1  ;;  %v706_v2 = vpop.f32.mrb[1].mxu0 }
 0x11d   :  { %v728_v3 = vpop.f32.mrb[1].mxu1  ;;  %v707_v4 = vadd.f32 %v706_v2, %v705_v0  ;;  %v708_v6 = vpop.f32.mrb[2].mxu0 }
 0x11e   :  { %v729_v5 = vadd.f32 %v728_v3, %v727_v1  ;;  %v730_v7 = vpop.f32.mrb[2].mxu1  ;;  %v709_v8 = vpop.f32.mrb[3].mxu0 }
 0x11f   :  { %v731_v9 = vpop.f32.mrb[3].mxu1 }
 0x120   :  { %v527_v10 = vadd.f32 %v729_v5, %v707_v4 }
 0x124   :  { %v606_v11 = vpop.f32.mrb[4].mxu1 }
 0x125   :  { %v761_v12 = vpop.f32.mrb[5].mxu1 }
 0x126   :  { %v609_v13 = vpop.f32.mrb[6].mxu1 }
 0x127   :  { %v762_v14 = vpop.f32.mrb[7].mxu1 }
 0x13b   :  { %v749_v15 = vpop.f32.mrb[4].mxu0 }
 0x13c   :  { %v750_v16 = vpop.f32.mrb[5].mxu0 }
 0x13d   :  { %v751_v17 = vadd.f32 %v750_v16, %v749_v15  ;;  %v752_v18 = vpop.f32.mrb[6].mxu0 }
 0x13e   :  { %v753_v19 = vpop.f32.mrb[7].mxu0 }
 0x13f   :  { %v567_v20 = vadd.f32 %v751_v17, %v527_v10 }
 0x141   :  { %v607_v22 = vadd.f32 %v606_v11, %v567_v20 }
 0x143   :  { %v619_v23 = vadd.f32 %v688_v21, %v607_v22 }
 0x145   :  { %621 = vst.msk [vmem:[#allocation7] sm:$0xff] %vm620_vm2, %v619_v23 }
 0x146   :  { %874 = shalt.err (!%p871_p6)
}
 0x147   :  { %s875_s16 = scalar_lea.hbm %s967_s3, 128 }
 0x148   :  { %p876_p7 = scmp.ne.s32.totalorder %s967_s3, %s875_s16  ;;  %p879_p8 = scmp.lt.u32.totalorder %s875_s16, %s967_s3 }
 0x14a   :  { %p881_p9 = pnand %p879_p8, %p876_p7 }
 0x14c   :  { %884 = shalt.err (!%p881_p9)
}
 0x14d   :  { %631 = dma.vmem_to_hbm [thread:$0]  %s629_s12, 128, %s967_s3, [#allocation4]  }
 0x14e   :  { %889 = dma.done.wait [#allocation4], 128  }
 0x14f   :  { %890 = vsyncadd [#allocation4], 4294967168 }
 0x150   :  { %635 = vsyncpa [#allocation3], 1 }
 0x151   :  { %636 = vsyncpa [#allocation6], 1 }
 0x152   :  { %637 = vsyncpa [#allocation4], 1 }

</bundles_post_ra>
